<compile_context>
chip_gen: v6e
topology: v6e:2x2x1
jax: 0.10.0
libtpu: 0.0.40
codegen_flags: <defaults>
</compile_context>

<pallas_src>
from functools import partial

import jax
import jax.numpy as jnp
from jax.experimental import pallas as pl
from jax.experimental.pallas import tpu as pltpu

_LANE = 128


def _n_round_robin_accs(c_in):
    """Independent f32 accumulators: enough to break the serial vadd chain
    without blowing vregs for large C_in (each chunk is ceil(C_in/8) vregs)."""
    vregs_per_chunk = max(1, -(-c_in // 8))
    return max(1, min(4, 16 // vregs_per_chunk))


def _sum_chunks(x_ref, n_chunks, c_in):
    """Sum the first `n_chunks` 128-lane chunks of the current (1, C_in, tile_s)
    block into a (1, C_in, 128) f32 lane-partial sum (VPU adds only; the
    cross-lane reduce is deferred to the finalize step)."""
    if n_chunks <= 0:
        return jnp.zeros((1, c_in, _LANE), jnp.float32)
    n_acc = min(_n_round_robin_accs(c_in), n_chunks)
    accs = [None] * n_acc
    for c in range(n_chunks):
        lo = c * _LANE
        chunk = x_ref[:, :, lo:lo + _LANE].astype(jnp.float32)
        i = c % n_acc
        accs[i] = chunk if accs[i] is None else accs[i] + chunk
    while len(accs) > 1:                     # tree-combine the accumulators
        nxt = [accs[i] + accs[i + 1] for i in range(0, len(accs) - 1, 2)]
        if len(accs) % 2:
            nxt.append(accs[-1])
        accs = nxt
    return accs[0]


def _sum_ragged_tail(x_ref, tail, c_in):
    """Sum the first `tail` (< tile_s, static) lanes of the ragged last tile.
    Lanes >= tail hold unspecified out-of-bounds block data and are masked."""
    n_full, rem = divmod(tail, _LANE)
    psum = _sum_chunks(x_ref, n_full, c_in)
    if rem:
        lo = n_full * _LANE
        chunk = x_ref[:, :, lo:lo + _LANE].astype(jnp.float32)
        lane = jax.lax.broadcasted_iota(jnp.int32, (1, c_in, _LANE), 2)
        psum = psum + jnp.where(lane < rem, chunk, 0.0)
    return psum


def attention3d_kernel(x_ref, w1_ref, b1_ref, w2_ref, b2_ref,
                       out_ref, acc_ref, *,
                       c_in, n_chunks, tail, inv_s, kn_start, kn_size):
    s = pl.program_id(1)
    last = pl.num_programs(1) - 1

    @pl.when(s == 0)
    def _init():
        acc_ref[...] = jnp.zeros_like(acc_ref)

    # ---- streaming lane-partial sum for AdaptiveAvgPool3d(1) ---------------
    if tail == 0:                  # S % tile_s == 0: single unmasked hot path
        acc_ref[...] = acc_ref[...] + _sum_chunks(x_ref, n_chunks, c_in)
    else:                          # ragged last tile: mask it in-kernel
        @pl.when(s != last)
        def _full_tile():
            acc_ref[...] = acc_ref[...] + _sum_chunks(x_ref, n_chunks, c_in)

        @pl.when(s == last)
        def _ragged_tile():
            acc_ref[...] = acc_ref[...] + _sum_ragged_tail(x_ref, tail, c_in)

    # ---- finalize: pool -> fc(+BN) -> ReLU -> fused projections -> acts ----
    @pl.when(s == last)
    def _finalize():
        pooled = jnp.sum(acc_ref[...], axis=-1) * inv_s              # (1, C_in)

        # fc (1x1x1 conv, BatchNorm folded in) + ReLU
        h = jnp.dot(pooled, w1_ref[...],
                    preferred_element_type=jnp.float32) + b1_ref[...]
        h = jnp.maximum(h, 0.0)                                      # (1, att)

        # fused channel/filter/spatial/kernel projection (1/T folded in)
        logits = jnp.dot(h, w2_ref[...],
                         preferred_element_type=jnp.float32) + b2_ref[...]

        # exact, overflow-safe sigmoid (finalize runs once per batch element,
        # so exact division costs nothing and tightens accuracy)
        z = jnp.exp(-jnp.abs(logits))
        r = 1.0 / (1.0 + z)
        sig = jnp.where(logits >= 0.0, r, z * r)

        # softmax restricted to the kernel-attention lanes; the exp argument
        # is masked BEFORE exp so no -inf ever reaches the EUP
        n_pad = logits.shape[-1]
        lane = jax.lax.broadcasted_iota(jnp.int32, (1, n_pad), 1)
        kn_mask = (lane >= kn_start) & (lane < kn_start + kn_size)
        m = jnp.max(jnp.where(kn_mask, logits, -1e30), axis=-1, keepdims=True)
        e = jnp.where(kn_mask, jnp.exp(jnp.where(kn_mask, logits - m, 0.0)), 0.0)
        sm = e / jnp.sum(e, axis=-1, keepdims=True)

        out_ref[0] = jnp.where(kn_mask, sm, sig)         # dense 128-lane store


def _tile_policy(c_in, S, itemsize, max_tile_s=None):
    """Generation-aware per-step tile size (in lanes) + scoped-VMEM limit."""
    kind = ""
    try:
        kind = jax.devices()[0].device_kind.lower()
    except Exception:
        pass
    if "v5e" in kind or "v5 lite" in kind or "v5lite" in kind:
        step_bytes = 2 << 20       # ~0.8 TB/s HBM: 2 MiB/step already ~roofline
    else:
        step_bytes = 4 << 20       # v6e / v7x / unknown
    vmem_limit = 48 << 20          # >> our ~2x4 MiB footprint, < v7x's 64 MiB/TC

    bytes_per_chunk = max(1, c_in * _LANE * itemsize)
    n_chunks = max(1, step_bytes // bytes_per_chunk)
    tile_s = n_chunks * _LANE
    tile_s = min(tile_s, pl.cdiv(S, _LANE) * _LANE)     # never bigger than needed
    if max_tile_s is not None:
        tile_s = min(tile_s, max(_LANE, (max_tile_s // _LANE) * _LANE))
    return tile_s, vmem_limit


def fold_attention3d_params(params, kernel_size, kernel_num, temperature=1.0):
    """Fold BN (inference affine) into fc and fuse the four projections with
    1/temperature.  Called once per model (hoisted out of the forward path)."""
    eps = 1e-5
    scale = params["bn_gamma"] / jnp.sqrt(params["bn_var"] + eps)
    bias = params["bn_beta"] - params["bn_mean"] * scale
    att = params["fc_w"].shape[0]
    inv_t = 1.0 / temperature
    w1 = (params["fc_w"].T * scale[None, :]).astype(jnp.float32)     # (C_in, att)
    b1 = bias.reshape(1, att).astype(jnp.float32)
    w2 = jnp.concatenate([params["channel_w"].T, params["filter_w"].T,
                          params["spatial_w"].T, params["kernel_w"].T],
                         axis=1) * inv_t                              # (att, n_total)
    b2 = jnp.concatenate([params["channel_b"], params["filter_b"],
                          params["spatial_b"], params["kernel_b"]])[None, :] * inv_t
    n_total = w2.shape[1]
    n_pad = pl.cdiv(n_total, _LANE) * _LANE
    w2 = jnp.pad(w2, ((0, 0), (0, n_pad - n_total))).astype(jnp.float32)
    b2 = jnp.pad(b2, ((0, 0), (0, n_pad - n_total))).astype(jnp.float32)
    return {"w1": w1, "b1": b1, "w2": w2, "b2": b2}


@partial(jax.jit, static_argnames=("c_out", "kernel_size", "kernel_num", "max_tile_s"))
def attention3d_forward(x, folded, *, c_out, kernel_size, kernel_num,
                        max_tile_s=None):
    B, C_in, D, H, W = x.shape
    S = D * H * W
    x_flat = x.reshape(B, C_in, S)            # native dtype; no pad, no copy

    itemsize = jnp.dtype(x.dtype).itemsize
    tile_s, vmem_limit = _tile_policy(C_in, S, itemsize, max_tile_s)
    n_chunks = tile_s // _LANE
    n_s = pl.cdiv(S, tile_s)
    tail = S % tile_s                          # 0 -> every tile is full
    grid = (B, n_s)

    w1, b1, w2, b2 = folded["w1"], folded["b1"], folded["w2"], folded["b2"]
    att = w1.shape[1]
    n_pad = w2.shape[1]
    k3 = kernel_size ** 3
    K = kernel_num
    kn_start = C_in + c_out + k3

    cost = pl.CostEstimate(
        flops=2 * B * C_in * S + 2 * B * (C_in * att + att * n_pad),
        transcendentals=2 * B * n_pad,
        bytes_accessed=(B * C_in * S * itemsize
                        + 4 * (w1.size + b1.size + w2.size + b2.size)
                        + 4 * B * n_pad),
    )

    kernel = partial(attention3d_kernel, c_in=C_in, n_chunks=n_chunks, tail=tail,
                     inv_s=1.0 / S, kn_start=kn_start, kn_size=K)

    attn = pl.pallas_call(
        kernel,
        out_shape=jax.ShapeDtypeStruct((B, 1, n_pad), jnp.float32),
        grid_spec=pltpu.PrefetchScalarGridSpec(
            num_scalar_prefetch=0,
            grid=grid,
            in_specs=[
                pl.BlockSpec((1, C_in, tile_s), lambda b, s: (b, 0, s)),
                pl.BlockSpec((C_in, att), lambda b, s: (0, 0)),
                pl.BlockSpec((1, att), lambda b, s: (0, 0)),
                pl.BlockSpec((att, n_pad), lambda b, s: (0, 0)),
                pl.BlockSpec((1, n_pad), lambda b, s: (0, 0)),
            ],
            out_specs=pl.BlockSpec((1, 1, n_pad), lambda b, s: (b, 0, 0)),
            scratch_shapes=[pltpu.VMEM((1, C_in, _LANE), jnp.float32)],
        ),
        compiler_params=pltpu.CompilerParams(
            dimension_semantics=("parallel", "arbitrary"),
            vmem_limit_bytes=vmem_limit,
        ),
        cost_estimate=cost,
    )(x_flat, w1, b1, w2, b2)

    attn = attn.reshape(B, n_pad)

    # Match the PyTorch output shapes exactly.
    channel_att = attn[:, 0:C_in].reshape(B, C_in, 1, 1, 1)
    filter_att = attn[:, C_in:C_in + c_out].reshape(B, c_out, 1, 1, 1)
    spatial_att = attn[:, C_in + c_out:C_in + c_out + k3].reshape(
        B, 1, 1, 1, kernel_size, kernel_size, kernel_size)
    kernel_att = attn[:, kn_start:kn_start + K].reshape(B, K, 1, 1, 1, 1, 1)
    return channel_att, filter_att, spatial_att, kernel_att


def attention3d_reference(x, params, kernel_size, kernel_num, temperature=1.0):
    """Pure-JAX reference for correctness checking."""
    B, C_in = x.shape[0], x.shape[1]
    eps = 1e-5
    pooled = jnp.mean(x.reshape(B, C_in, -1).astype(jnp.float32), axis=-1)
    h = pooled @ params["fc_w"].T
    scale = params["bn_gamma"] / jnp.sqrt(params["bn_var"] + eps)
    bias = params["bn_beta"] - params["bn_mean"] * scale
    h = jnp.maximum(h * scale + bias, 0.0)
    ch = jax.nn.sigmoid((h @ params["channel_w"].T + params["channel_b"]) / temperature)
    fl = jax.nn.sigmoid((h @ params["filter_w"].T + params["filter_b"]) / temperature)
    sp = jax.nn.sigmoid((h @ params["spatial_w"].T + params["spatial_b"]) / temperature)
    kn = jax.nn.softmax((h @ params["kernel_w"].T + params["kernel_b"]) / temperature,
                        axis=-1)
    return (ch.reshape(B, -1, 1, 1, 1),
            fl.reshape(B, -1, 1, 1, 1),
            sp.reshape(B, 1, 1, 1, kernel_size, kernel_size, kernel_size),
            kn.reshape(B, kernel_num, 1, 1, 1, 1, 1))


def init_params(key, in_planes, out_planes, attention_channel,
                kernel_size, kernel_num):
    """Deterministic kaiming-normal(fan_out) init, zero biases, BN at defaults."""
    keys = jax.random.split(key, 5)

    def kaiming(k, out_c, in_c):
        # Conv3d weight (out, in, 1, 1, 1): fan_out = out * 1 * 1 * 1
        return jax.random.normal(k, (out_c, in_c), jnp.float32) * jnp.sqrt(2.0 / out_c)

    return {
        "fc_w": kaiming(keys[0], attention_channel, in_planes),
        "bn_gamma": jnp.ones((attention_channel,), jnp.float32),
        "bn_beta": jnp.zeros((attention_channel,), jnp.float32),
        "bn_mean": jnp.zeros((attention_channel,), jnp.float32),
        "bn_var": jnp.ones((attention_channel,), jnp.float32),
        "channel_w": kaiming(keys[1], in_planes, attention_channel),
        "channel_b": jnp.zeros((in_planes,), jnp.float32),
        "filter_w": kaiming(keys[2], out_planes, attention_channel),
        "filter_b": jnp.zeros((out_planes,), jnp.float32),
        "spatial_w": kaiming(keys[3], kernel_size ** 3, attention_channel),
        "spatial_b": jnp.zeros((kernel_size ** 3,), jnp.float32),
        "kernel_w": kaiming(keys[4], kernel_num, attention_channel),
        "kernel_b": jnp.zeros((kernel_num,), jnp.float32),
    }


if __name__ == "__main__":
    # Module hyper-params (general path: all four attention branches active).
    in_planes, out_planes = 16, 32
    kernel_size, kernel_num = 3, 4
    reduction, min_channel = 0.0625, 16
    attention_channel = max(int(in_planes * reduction), min_channel)   # -> 16

    key = jax.random.PRNGKey(0)
    k_par, k_x1, k_x2, k_x3 = jax.random.split(key, 4)
    params = init_params(k_par, in_planes, out_planes, attention_channel,
                         kernel_size, kernel_num)
    folded = fold_attention3d_params(params, kernel_size, kernel_num)   # hoisted fold

    fwd = partial(attention3d_forward, c_out=out_planes,
                  kernel_size=kernel_size, kernel_num=kernel_num)

    # case 1: lane-aligned spatial size (single full-tile path)
    B1, D1, H1, W1 = 2, 16, 16, 16            # S = 4096
    x1 = jax.random.normal(k_x1, (B1, in_planes, D1, H1, W1), jnp.float32)
    outs1 = jax.block_until_ready(fwd(x1, folded))
    refs1 = attention3d_reference(x1, params, kernel_size, kernel_num)

    # case 2: ragged spatial size (S = 105): in-kernel tail mask, no wrapper pad
    B2, D2, H2, W2 = 2, 3, 5, 7               # S = 105
    x2 = jax.random.normal(k_x2, (B2, in_planes, D2, H2, W2), jnp.float32)
    outs2 = jax.block_until_ready(fwd(x2, folded))
    refs2 = attention3d_reference(x2, params, kernel_size, kernel_num)

    # case 3: multi-step S reduction with a ragged last tile (forced small tile)
    B3, D3, H3, W3 = 1, 5, 10, 20             # S = 1000; tile 256 -> 4 steps, tail 232
    x3 = jax.random.normal(k_x3, (B3, in_planes, D3, H3, W3), jnp.float32)
    outs3 = jax.block_until_ready(fwd(x3, folded, max_tile_s=256))
    refs3 = attention3d_reference(x3, params, kernel_size, kernel_num)

    # shape checks (match the PyTorch module outputs exactly)
    ch, fl, sp, kn = outs1
    assert ch.shape == (B1, in_planes, 1, 1, 1)
    assert fl.shape == (B1, out_planes, 1, 1, 1)
    assert sp.shape == (B1, 1, 1, 1, kernel_size, kernel_size, kernel_size)
    assert kn.shape == (B1, kernel_num, 1, 1, 1, 1, 1)

    # kernel attention is a softmax over dim 1 -> sums to 1 (exact reciprocal now)
    assert jnp.allclose(jnp.sum(kn, axis=1), 1.0, atol=1e-5)

    # numerical check vs. pure-JAX reference
    for o, r in zip(outs1 + outs2 + outs3, refs1 + refs2 + refs3):
        assert o.shape == r.shape
        err = float(jnp.max(jnp.abs(o - r)))
        assert err < 2e-3, err

    print("KERNEL_OK")
</pallas_src>

<mosaic_0001>
module attributes {stable_mosaic.version = 11 : i64} {
  func.func @attention3d_kernel(%arg0: i32, %arg1: i32, %arg2: memref<1x16x4096xf32, #tpu.memory_space<vmem>>, %arg3: memref<16x16xf32, #tpu.memory_space<vmem>>, %arg4: memref<1x16xf32, #tpu.memory_space<vmem>>, %arg5: memref<16x128xf32, #tpu.memory_space<vmem>>, %arg6: memref<1x128xf32, #tpu.memory_space<vmem>>, %arg7: memref<1x1x128xf32, #tpu.memory_space<vmem>>, %arg8: memref<1x16x128xf32, #tpu.memory_space<vmem>>) attributes {dimension_semantics = [#tpu.dimension_semantics<parallel>, #tpu.dimension_semantics<arbitrary>], iteration_bounds = array<i64: 2, 1>, scalar_prefetch = 0 : i64, scratch_operands = 1 : i64, tpu.core_type = #tpu.core_type<tc>, window_params = [{transform_indices = @transform_0, window_bounds = array<i64: 1, 16, 4096>}, {pipeline_mode = #tpu.pipeline_mode<synchronous>, transform_indices = @transform_1, window_bounds = array<i64: 16, 16>}, {pipeline_mode = #tpu.pipeline_mode<synchronous>, transform_indices = @transform_2, window_bounds = array<i64: 1, 16>}, {pipeline_mode = #tpu.pipeline_mode<synchronous>, transform_indices = @transform_3, window_bounds = array<i64: 16, 128>}, {pipeline_mode = #tpu.pipeline_mode<synchronous>, transform_indices = @transform_4, window_bounds = array<i64: 1, 128>}, {transform_indices = @transform_5, window_bounds = array<i64: 1, 1, 128>}]} {
    %c0_i32 = arith.constant 0 : i32
    %0 = arith.cmpi eq, %arg1, %c0_i32 : i32
    %1 = arith.extui %0 : i1 to i32
    %c0_i32_0 = arith.constant 0 : i32
    %2 = arith.cmpi ne, %1, %c0_i32_0 : i32
    scf.if %2 {
      %cst = arith.constant 0.000000e+00 : f32
      %72 = vector.broadcast %cst : f32 to vector<1x16x128xf32>
      %c0_73 = arith.constant 0 : index
      %c0_74 = arith.constant 0 : index
      %c0_75 = arith.constant 0 : index
      %73 = vector.load %arg8[%c0_73, %c0_74, %c0_75] : memref<1x16x128xf32, #tpu.memory_space<vmem>>, vector<1x16x128xf32>
      tpu.vector_store %arg8[%c0_73, %c0_74, %c0_75], %72 {strides = array<i32>} : memref<1x16x128xf32, #tpu.memory_space<vmem>>, vector<1x16x128xf32>,
    } else {
    }
    %c0 = arith.constant 0 : index
    %c0_1 = arith.constant 0 : index
    %c0_2 = arith.constant 0 : index
    %3 = vector.load %arg8[%c0, %c0_1, %c0_2] : memref<1x16x128xf32, #tpu.memory_space<vmem>>, vector<1x16x128xf32>
    %c0_3 = arith.constant 0 : index
    %c0_4 = arith.constant 0 : index
    %c0_5 = arith.constant 0 : index
    %4 = vector.load %arg2[%c0_3, %c0_4, %c0_5] : memref<1x16x4096xf32, #tpu.memory_space<vmem>>, vector<1x16x128xf32>
    %c0_6 = arith.constant 0 : index
    %c0_7 = arith.constant 0 : index
    %c128 = arith.constant 128 : index
    %5 = vector.load %arg2[%c0_6, %c0_7, %c128] : memref<1x16x4096xf32, #tpu.memory_space<vmem>>, vector<1x16x128xf32>
    %c0_8 = arith.constant 0 : index
    %c0_9 = arith.constant 0 : index
    %c256 = arith.constant 256 : index
    %6 = vector.load %arg2[%c0_8, %c0_9, %c256] : memref<1x16x4096xf32, #tpu.memory_space<vmem>>, vector<1x16x128xf32>
    %c0_10 = arith.constant 0 : index
    %c0_11 = arith.constant 0 : index
    %c384 = arith.constant 384 : index
    %7 = vector.load %arg2[%c0_10, %c0_11, %c384] : memref<1x16x4096xf32, #tpu.memory_space<vmem>>, vector<1x16x128xf32>
    %c0_12 = arith.constant 0 : index
    %c0_13 = arith.constant 0 : index
    %c512 = arith.constant 512 : index
    %8 = vector.load %arg2[%c0_12, %c0_13, %c512] : memref<1x16x4096xf32, #tpu.memory_space<vmem>>, vector<1x16x128xf32>
    %9 = arith.addf %4, %8 : vector<1x16x128xf32>
    %c0_14 = arith.constant 0 : index
    %c0_15 = arith.constant 0 : index
    %c640 = arith.constant 640 : index
    %10 = vector.load %arg2[%c0_14, %c0_15, %c640] : memref<1x16x4096xf32, #tpu.memory_space<vmem>>, vector<1x16x128xf32>
    %11 = arith.addf %5, %10 : vector<1x16x128xf32>
    %c0_16 = arith.constant 0 : index
    %c0_17 = arith.constant 0 : index
    %c768 = arith.constant 768 : index
    %12 = vector.load %arg2[%c0_16, %c0_17, %c768] : memref<1x16x4096xf32, #tpu.memory_space<vmem>>, vector<1x16x128xf32>
    %13 = arith.addf %6, %12 : vector<1x16x128xf32>
    %c0_18 = arith.constant 0 : index
    %c0_19 = arith.constant 0 : index
    %c896 = arith.constant 896 : index
    %14 = vector.load %arg2[%c0_18, %c0_19, %c896] : memref<1x16x4096xf32, #tpu.memory_space<vmem>>, vector<1x16x128xf32>
    %15 = arith.addf %7, %14 : vector<1x16x128xf32>
    %c0_20 = arith.constant 0 : index
    %c0_21 = arith.constant 0 : index
    %c1024 = arith.constant 1024 : index
    %16 = vector.load %arg2[%c0_20, %c0_21, %c1024] : memref<1x16x4096xf32, #tpu.memory_space<vmem>>, vector<1x16x128xf32>
    %17 = arith.addf %9, %16 : vector<1x16x128xf32>
    %c0_22 = arith.constant 0 : index
    %c0_23 = arith.constant 0 : index
    %c1152 = arith.constant 1152 : index
    %18 = vector.load %arg2[%c0_22, %c0_23, %c1152] : memref<1x16x4096xf32, #tpu.memory_space<vmem>>, vector<1x16x128xf32>
    %19 = arith.addf %11, %18 : vector<1x16x128xf32>
    %c0_24 = arith.constant 0 : index
    %c0_25 = arith.constant 0 : index
    %c1280 = arith.constant 1280 : index
    %20 = vector.load %arg2[%c0_24, %c0_25, %c1280] : memref<1x16x4096xf32, #tpu.memory_space<vmem>>, vector<1x16x128xf32>
    %21 = arith.addf %13, %20 : vector<1x16x128xf32>
    %c0_26 = arith.constant 0 : index
    %c0_27 = arith.constant 0 : index
    %c1408 = arith.constant 1408 : index
    %22 = vector.load %arg2[%c0_26, %c0_27, %c1408] : memref<1x16x4096xf32, #tpu.memory_space<vmem>>, vector<1x16x128xf32>
    %23 = arith.addf %15, %22 : vector<1x16x128xf32>
    %c0_28 = arith.constant 0 : index
    %c0_29 = arith.constant 0 : index
    %c1536 = arith.constant 1536 : index
    %24 = vector.load %arg2[%c0_28, %c0_29, %c1536] : memref<1x16x4096xf32, #tpu.memory_space<vmem>>, vector<1x16x128xf32>
    %25 = arith.addf %17, %24 : vector<1x16x128xf32>
    %c0_30 = arith.constant 0 : index
    %c0_31 = arith.constant 0 : index
    %c1664 = arith.constant 1664 : index
    %26 = vector.load %arg2[%c0_30, %c0_31, %c1664] : memref<1x16x4096xf32, #tpu.memory_space<vmem>>, vector<1x16x128xf32>
    %27 = arith.addf %19, %26 : vector<1x16x128xf32>
    %c0_32 = arith.constant 0 : index
    %c0_33 = arith.constant 0 : index
    %c1792 = arith.constant 1792 : index
    %28 = vector.load %arg2[%c0_32, %c0_33, %c1792] : memref<1x16x4096xf32, #tpu.memory_space<vmem>>, vector<1x16x128xf32>
    %29 = arith.addf %21, %28 : vector<1x16x128xf32>
    %c0_34 = arith.constant 0 : index
    %c0_35 = arith.constant 0 : index
    %c1920 = arith.constant 1920 : index
    %30 = vector.load %arg2[%c0_34, %c0_35, %c1920] : memref<1x16x4096xf32, #tpu.memory_space<vmem>>, vector<1x16x128xf32>
    %31 = arith.addf %23, %30 : vector<1x16x128xf32>
    %c0_36 = arith.constant 0 : index
    %c0_37 = arith.constant 0 : index
    %c2048 = arith.constant 2048 : index
    %32 = vector.load %arg2[%c0_36, %c0_37, %c2048] : memref<1x16x4096xf32, #tpu.memory_space<vmem>>, vector<1x16x128xf32>
    %33 = arith.addf %25, %32 : vector<1x16x128xf32>
    %c0_38 = arith.constant 0 : index
    %c0_39 = arith.constant 0 : index
    %c2176 = arith.constant 2176 : index
    %34 = vector.load %arg2[%c0_38, %c0_39, %c2176] : memref<1x16x4096xf32, #tpu.memory_space<vmem>>, vector<1x16x128xf32>
    %35 = arith.addf %27, %34 : vector<1x16x128xf32>
    %c0_40 = arith.constant 0 : index
    %c0_41 = arith.constant 0 : index
    %c2304 = arith.constant 2304 : index
    %36 = vector.load %arg2[%c0_40, %c0_41, %c2304] : memref<1x16x4096xf32, #tpu.memory_space<vmem>>, vector<1x16x128xf32>
    %37 = arith.addf %29, %36 : vector<1x16x128xf32>
    %c0_42 = arith.constant 0 : index
    %c0_43 = arith.constant 0 : index
    %c2432 = arith.constant 2432 : index
    %38 = vector.load %arg2[%c0_42, %c0_43, %c2432] : memref<1x16x4096xf32, #tpu.memory_space<vmem>>, vector<1x16x128xf32>
    %39 = arith.addf %31, %38 : vector<1x16x128xf32>
    %c0_44 = arith.constant 0 : index
    %c0_45 = arith.constant 0 : index
    %c2560 = arith.constant 2560 : index
    %40 = vector.load %arg2[%c0_44, %c0_45, %c2560] : memref<1x16x4096xf32, #tpu.memory_space<vmem>>, vector<1x16x128xf32>
    %41 = arith.addf %33, %40 : vector<1x16x128xf32>
    %c0_46 = arith.constant 0 : index
    %c0_47 = arith.constant 0 : index
    %c2688 = arith.constant 2688 : index
    %42 = vector.load %arg2[%c0_46, %c0_47, %c2688] : memref<1x16x4096xf32, #tpu.memory_space<vmem>>, vector<1x16x128xf32>
    %43 = arith.addf %35, %42 : vector<1x16x128xf32>
    %c0_48 = arith.constant 0 : index
    %c0_49 = arith.constant 0 : index
    %c2816 = arith.constant 2816 : index
    %44 = vector.load %arg2[%c0_48, %c0_49, %c2816] : memref<1x16x4096xf32, #tpu.memory_space<vmem>>, vector<1x16x128xf32>
    %45 = arith.addf %37, %44 : vector<1x16x128xf32>
    %c0_50 = arith.constant 0 : index
    %c0_51 = arith.constant 0 : index
    %c2944 = arith.constant 2944 : index
    %46 = vector.load %arg2[%c0_50, %c0_51, %c2944] : memref<1x16x4096xf32, #tpu.memory_space<vmem>>, vector<1x16x128xf32>
    %47 = arith.addf %39, %46 : vector<1x16x128xf32>
    %c0_52 = arith.constant 0 : index
    %c0_53 = arith.constant 0 : index
    %c3072 = arith.constant 3072 : index
    %48 = vector.load %arg2[%c0_52, %c0_53, %c3072] : memref<1x16x4096xf32, #tpu.memory_space<vmem>>, vector<1x16x128xf32>
    %49 = arith.addf %41, %48 : vector<1x16x128xf32>
    %c0_54 = arith.constant 0 : index
    %c0_55 = arith.constant 0 : index
    %c3200 = arith.constant 3200 : index
    %50 = vector.load %arg2[%c0_54, %c0_55, %c3200] : memref<1x16x4096xf32, #tpu.memory_space<vmem>>, vector<1x16x128xf32>
    %51 = arith.addf %43, %50 : vector<1x16x128xf32>
    %c0_56 = arith.constant 0 : index
    %c0_57 = arith.constant 0 : index
    %c3328 = arith.constant 3328 : index
    %52 = vector.load %arg2[%c0_56, %c0_57, %c3328] : memref<1x16x4096xf32, #tpu.memory_space<vmem>>, vector<1x16x128xf32>
    %53 = arith.addf %45, %52 : vector<1x16x128xf32>
    %c0_58 = arith.constant 0 : index
    %c0_59 = arith.constant 0 : index
    %c3456 = arith.constant 3456 : index
    %54 = vector.load %arg2[%c0_58, %c0_59, %c3456] : memref<1x16x4096xf32, #tpu.memory_space<vmem>>, vector<1x16x128xf32>
    %55 = arith.addf %47, %54 : vector<1x16x128xf32>
    %c0_60 = arith.constant 0 : index
    %c0_61 = arith.constant 0 : index
    %c3584 = arith.constant 3584 : index
    %56 = vector.load %arg2[%c0_60, %c0_61, %c3584] : memref<1x16x4096xf32, #tpu.memory_space<vmem>>, vector<1x16x128xf32>
    %57 = arith.addf %49, %56 : vector<1x16x128xf32>
    %c0_62 = arith.constant 0 : index
    %c0_63 = arith.constant 0 : index
    %c3712 = arith.constant 3712 : index
    %58 = vector.load %arg2[%c0_62, %c0_63, %c3712] : memref<1x16x4096xf32, #tpu.memory_space<vmem>>, vector<1x16x128xf32>
    %59 = arith.addf %51, %58 : vector<1x16x128xf32>
    %c0_64 = arith.constant 0 : index
    %c0_65 = arith.constant 0 : index
    %c3840 = arith.constant 3840 : index
    %60 = vector.load %arg2[%c0_64, %c0_65, %c3840] : memref<1x16x4096xf32, #tpu.memory_space<vmem>>, vector<1x16x128xf32>
    %61 = arith.addf %53, %60 : vector<1x16x128xf32>
    %c0_66 = arith.constant 0 : index
    %c0_67 = arith.constant 0 : index
    %c3968 = arith.constant 3968 : index
    %62 = vector.load %arg2[%c0_66, %c0_67, %c3968] : memref<1x16x4096xf32, #tpu.memory_space<vmem>>, vector<1x16x128xf32>
    %63 = arith.addf %55, %62 : vector<1x16x128xf32>
    %64 = arith.addf %57, %59 : vector<1x16x128xf32>
    %65 = arith.addf %61, %63 : vector<1x16x128xf32>
    %66 = arith.addf %64, %65 : vector<1x16x128xf32>
    %67 = arith.addf %3, %66 : vector<1x16x128xf32>
    %c0_68 = arith.constant 0 : index
    %c0_69 = arith.constant 0 : index
    %c0_70 = arith.constant 0 : index
    %68 = vector.load %arg8[%c0_68, %c0_69, %c0_70] : memref<1x16x128xf32, #tpu.memory_space<vmem>>, vector<1x16x128xf32>
    tpu.vector_store %arg8[%c0_68, %c0_69, %c0_70], %67 {strides = array<i32>} : memref<1x16x128xf32, #tpu.memory_space<vmem>>, vector<1x16x128xf32>,
    %c0_i32_71 = arith.constant 0 : i32
    %69 = arith.cmpi eq, %arg1, %c0_i32_71 : i32
    %70 = arith.extui %69 : i1 to i32
    %c0_i32_72 = arith.constant 0 : i32
    %71 = arith.cmpi ne, %70, %c0_i32_72 : i32
    scf.if %71 {
      %c0_73 = arith.constant 0 : index
      %c0_74 = arith.constant 0 : index
      %c0_75 = arith.constant 0 : index
      %72 = vector.load %arg8[%c0_73, %c0_74, %c0_75] : memref<1x16x128xf32, #tpu.memory_space<vmem>>, vector<1x16x128xf32>
      %cst = arith.constant dense<0.000000e+00> : vector<1x16xf32>
      %73 = vector.multi_reduction <add>, %72, %cst [2] : vector<1x16x128xf32> to vector<1x16xf32>
      %cst_76 = arith.constant 2.44140625E-4 : f32
      %74 = vector.broadcast %cst_76 : f32 to vector<1x16xf32>
      %75 = arith.mulf %73, %74 : vector<1x16xf32>
      %c0_77 = arith.constant 0 : index
      %c0_78 = arith.constant 0 : index
      %76 = vector.load %arg3[%c0_77, %c0_78] : memref<16x16xf32, #tpu.memory_space<vmem>>, vector<16x16xf32>
      %cst_79 = arith.constant dense<0.000000e+00> : vector<1x16xf32>
      %77 = tpu.matmul %75, %76, %cst_79 {dimension_numbers = #tpu.dot_dimension_numbers<[1], [0], [0], [1], [0, 0, 1, 1], [], []>} : vector<1x16xf32>, vector<16x16xf32>, vector<1x16xf32> -> vector<1x16xf32>
      %c0_80 = arith.constant 0 : index
      %c0_81 = arith.constant 0 : index
      %78 = vector.load %arg4[%c0_80, %c0_81] : memref<1x16xf32, #tpu.memory_space<vmem>>, vector<1x16xf32>
      %79 = arith.addf %77, %78 : vector<1x16xf32>
      %cst_82 = arith.constant 0.000000e+00 : f32
      %80 = vector.broadcast %cst_82 : f32 to vector<1x16xf32>
      %81 = arith.maximumf %79, %80 : vector<1x16xf32>
      %c0_83 = arith.constant 0 : index
      %c0_84 = arith.constant 0 : index
      %82 = vector.load %arg5[%c0_83, %c0_84] : memref<16x128xf32, #tpu.memory_space<vmem>>, vector<16x128xf32>
      %cst_85 = arith.constant dense<0.000000e+00> : vector<1x128xf32>
      %83 = tpu.matmul %81, %82, %cst_85 {dimension_numbers = #tpu.dot_dimension_numbers<[1], [0], [0], [1], [0, 0, 1, 1], [], []>} : vector<1x16xf32>, vector<16x128xf32>, vector<1x128xf32> -> vector<1x128xf32>
      %c0_86 = arith.constant 0 : index
      %c0_87 = arith.constant 0 : index
      %84 = vector.load %arg6[%c0_86, %c0_87] : memref<1x128xf32, #tpu.memory_space<vmem>>, vector<1x128xf32>
      %85 = arith.addf %83, %84 : vector<1x128xf32>
      %86 = math.absf %85 : vector<1x128xf32>
      %cst_88 = arith.constant 0.000000e+00 : f32
      %87 = vector.broadcast %cst_88 : f32 to vector<1x128xf32>
      %88 = arith.subf %87, %86 : vector<1x128xf32>
      %89 = math.exp %88 : vector<1x128xf32>
      %cst_89 = arith.constant 1.000000e+00 : f32
      %90 = vector.broadcast %cst_89 : f32 to vector<1x128xf32>
      %91 = arith.addf %90, %89 : vector<1x128xf32>
      %cst_90 = arith.constant 1.000000e+00 : f32
      %92 = vector.broadcast %cst_90 : f32 to vector<1x128xf32>
      %93 = arith.divf %92, %91 : vector<1x128xf32>
      %cst_91 = arith.constant 0.000000e+00 : f32
      %94 = vector.broadcast %cst_91 : f32 to vector<1x128xf32>
      %95 = arith.cmpf oge, %85, %94 : vector<1x128xf32>
      %96 = arith.mulf %89, %93 : vector<1x128xf32>
      %97 = arith.select %95, %93, %96 : vector<1x128xi1>, vector<1x128xf32>
      %98 = tpu.iota {dimensions = array<i32: 1>} : vector<1x128xi32>
      %c75_i32 = arith.constant 75 : i32
      %99 = vector.broadcast %c75_i32 : i32 to vector<1x128xi32>
      %100 = arith.cmpi sge, %98, %99 : vector<1x128xi32>
      %c79_i32 = arith.constant 79 : i32
      %101 = vector.broadcast %c79_i32 : i32 to vector<1x128xi32>
      %102 = arith.cmpi slt, %98, %101 : vector<1x128xi32>
      %103 = arith.andi %100, %102 : vector<1x128xi1>
      %cst_92 = arith.constant -1.000000e+30 : f32
      %104 = vector.broadcast %cst_92 : f32 to vector<1x128xf32>
      %105 = arith.select %103, %85, %104 : vector<1x128xi1>, vector<1x128xf32>
      %cst_93 = arith.constant dense<0xFF800000> : vector<1xf32>
      %106 = vector.multi_reduction <maximumf>, %105, %cst_93 [1] : vector<1x128xf32> to vector<1xf32>
      %107 = vector.shape_cast %106 : vector<1xf32> to vector<1x1xf32>
      %108 = vector.broadcast %107 : vector<1x1xf32> to vector<1x128xf32>
      %109 = arith.subf %85, %108 : vector<1x128xf32>
      %cst_94 = arith.constant 0.000000e+00 : f32
      %110 = vector.broadcast %cst_94 : f32 to vector<1x128xf32>
      %111 = arith.select %103, %109, %110 : vector<1x128xi1>, vector<1x128xf32>
      %112 = math.exp %111 : vector<1x128xf32>
      %cst_95 = arith.constant 0.000000e+00 : f32
      %113 = vector.broadcast %cst_95 : f32 to vector<1x128xf32>
      %114 = arith.select %103, %112, %113 : vector<1x128xi1>, vector<1x128xf32>
      %cst_96 = arith.constant dense<0.000000e+00> : vector<1xf32>
      %115 = vector.multi_reduction <add>, %114, %cst_96 [1] : vector<1x128xf32> to vector<1xf32>
      %116 = vector.shape_cast %115 : vector<1xf32> to vector<1x1xf32>
      %117 = vector.broadcast %116 : vector<1x1xf32> to vector<1x128xf32>
      %118 = arith.divf %114, %117 : vector<1x128xf32>
      %119 = arith.select %103, %118, %97 : vector<1x128xi1>, vector<1x128xf32>
      %c0_97 = arith.constant 0 : index
      %c0_98 = arith.constant 0 : index
      %c0_99 = arith.constant 0 : index
      %120 = vector.load %arg7[%c0_97, %c0_98, %c0_99] : memref<1x1x128xf32, #tpu.memory_space<vmem>>, vector<1x1x128xf32>
      %121 = vector.shape_cast %120 : vector<1x1x128xf32> to vector<1x128xf32>
      %122 = vector.shape_cast %119 : vector<1x128xf32> to vector<1x1x128xf32>
      tpu.vector_store %arg7[%c0_97, %c0_98, %c0_99], %122 {strides = array<i32>} : memref<1x1x128xf32, #tpu.memory_space<vmem>>, vector<1x1x128xf32>,
    } else {
    }
    return
  }
  func.func @transform_0(%arg0: i32, %arg1: i32) -> (i32, i32, i32) {
    %c0_i32 = arith.constant 0 : i32
    %c0_i32_0 = arith.constant 0 : i32
    return %arg0, %c0_i32, %arg1 : i32, i32, i32
  }
  func.func @transform_1(%arg0: i32, %arg1: i32) -> (i32, i32) {
    %c0_i32 = arith.constant 0 : i32
    %c0_i32_0 = arith.constant 0 : i32
    %c0_i32_1 = arith.constant 0 : i32
    return %c0_i32, %c0_i32_0 : i32, i32
  }
  func.func @transform_2(%arg0: i32, %arg1: i32) -> (i32, i32) {
    %c0_i32 = arith.constant 0 : i32
    %c0_i32_0 = arith.constant 0 : i32
    %c0_i32_1 = arith.constant 0 : i32
    return %c0_i32, %c0_i32_0 : i32, i32
  }
  func.func @transform_3(%arg0: i32, %arg1: i32) -> (i32, i32) {
    %c0_i32 = arith.constant 0 : i32
    %c0_i32_0 = arith.constant 0 : i32
    %c0_i32_1 = arith.constant 0 : i32
    return %c0_i32, %c0_i32_0 : i32, i32
  }
  func.func @transform_4(%arg0: i32, %arg1: i32) -> (i32, i32) {
    %c0_i32 = arith.constant 0 : i32
    %c0_i32_0 = arith.constant 0 : i32
    %c0_i32_1 = arith.constant 0 : i32
    return %c0_i32, %c0_i32_0 : i32, i32
  }
  func.func @transform_5(%arg0: i32, %arg1: i32) -> (i32, i32, i32) {
    %c0_i32 = arith.constant 0 : i32
    %c0_i32_0 = arith.constant 0 : i32
    %c0_i32_1 = arith.constant 0 : i32
    return %arg0, %c0_i32, %c0_i32_0 : i32, i32, i32
  }
}

</mosaic_0001>

<bundles_post_ra>
// kernel: attention3d_forward.1
= control target key start
LH: loop header
LB: loop body
LE: loop exit
PB: predicated region body
PF: predicated region fallthrough
CT: control target
= control target key end

     0   :  { %s779_s18 = smov 0   ;;  %s781_s19 = smov 0   ;;  %s912_s0 = inlined_call_operand.vmem [shape: f32[2,16,4096], index: 0, kind: input, shape index: {}]   ;;  %s913_s1 = inlined_call_operand.vmem [shape: f32[16,16], index: 1, kind: input, shape index: {}]   ;;  %s914_s2 = inlined_call_operand.vmem [shape: f32[1,16], index: 2, kind: input, shape index: {}]   ;;  %s915_s3 = inlined_call_operand.vmem [shape: f32[16,128], index: 3, kind: input, shape index: {}]   ;;  %s916_s4 = inlined_call_operand.vmem [shape: f32[1,128], index: 4, kind: input, shape index: {}]   ;;  %s917_s5 = inlined_call_operand.vmem [shape: f32[2,1,128], index: 5, kind: output, shape index: {}]  }
   0x1   :  { %s783_s20 = smov 0  }
   0x2 LB: > { %s27_s21 = sadd.s32 1, %s741_s19  ;;  %p661_p0 = scmp.ge.s32.totalorder %s745_s20, 1  ;;  %s745_s20 = sphi %s783_s20, %s15_s20   ;;  %s741_s19 = sphi %s781_s19, %s921_s19   ;;  %s737_s18 = sphi %s779_s18, %s920_s18  }
   0x3   : > { %p29_p1 = scmp.ge.s32.totalorder %s27_s21, 2  ;;  %p206_p2 = scmp.lt.s32.totalorder %s745_s20, 3 }
   0x5   : > { %s923_s21 = smov (%p29_p1, %s27_s21), 0  ;;  %p207_p3 = pnand %p661_p0, %p206_p2 }
   0x6   : > { %p237_p4 = scmp.lt.s32.totalorder (!%p207_p3), %s737_s18, 1 }
   0x7   : > { %210 = sbr.rel (%p207_p3) target bundleno = 899 (0x383), region = 40 }
   0xc   : > { %s925_s18 = smov (!%p237_p4, %s737_s18), 1  ;;  %vm748_vm0 = vmmov 0   ;;  %vm414_vm1 = vcmask 130112   ;;  %vm416_vm2 = vcmask 130048   ;;  %vm580_vm6 = vcmask 1040384  }
   0xd   : > { %s668_s22 = sshll.u32 %s925_s18, 9  ;;  %s248_s15 = scalar_lea.vmem %s917_s5, %s925_s18 }
   0xe   : > { %s803_s25 = scalar_lea.vmem %s912_s0, %s668_s22 }
   0xf   : > { %v257_v0 = vld [vmem:[%s803_s25] sm:$0xff]  ;;  %v259_v1 = vld [vmem:[%s803_s25 + $0x8] sm:$0xff]  ;;  %v261_v2 = vld [vmem:[%s803_s25 + $0x10] sm:$0xff] }
  0x10   : > { %v263_v3 = vld [vmem:[%s803_s25 + $0x18] sm:$0xff]  ;;  %v265_v4 = vld [vmem:[%s803_s25 + $0x20] sm:$0xff]  ;;  %v269_v5 = vld [vmem:[%s803_s25 + $0x28] sm:$0xff] }
  0x11   : > { %v267_v6 = vadd.f32 %v265_v4, %v257_v0  ;;  %v271_v7 = vadd.f32 %v269_v5, %v259_v1  ;;  %v273_v8 = vld [vmem:[%s803_s25 + $0x30] sm:$0xff]  ;;  %v277_v9 = vld [vmem:[%s803_s25 + $0x38] sm:$0xff]  ;;  %v281_v10 = vld [vmem:[%s803_s25 + $0x40] sm:$0xff] }
  0x12   : > { %v275_v11 = vadd.f32 %v273_v8, %v261_v2  ;;  %v279_v12 = vadd.f32 %v277_v9, %v263_v3  ;;  %v285_v13 = vld [vmem:[%s803_s25 + $0x48] sm:$0xff]  ;;  %v289_v14 = vld [vmem:[%s803_s25 + $0x50] sm:$0xff]  ;;  %v293_v15 = vld [vmem:[%s803_s25 + $0x58] sm:$0xff] }
  0x13   : > { %v283_v16 = vadd.f32 %v281_v10, %v267_v6  ;;  %v287_v17 = vadd.f32 %v285_v13, %v271_v7  ;;  %v297_v18 = vld [vmem:[%s803_s25 + $0x60] sm:$0xff]  ;;  %v301_v19 = vld [vmem:[%s803_s25 + $0x68] sm:$0xff]  ;;  %v305_v20 = vld [vmem:[%s803_s25 + $0x70] sm:$0xff] }
  0x14   : > { %v291_v21 = vadd.f32 %v289_v14, %v275_v11  ;;  %v295_v22 = vadd.f32 %v293_v15, %v279_v12  ;;  %v309_v23 = vld [vmem:[%s803_s25 + $0x78] sm:$0xff]  ;;  %v313_v24 = vld [vmem:[%s803_s25 + $0x80] sm:$0xff]  ;;  %v317_v25 = vld [vmem:[%s803_s25 + $0x88] sm:$0xff] }
  0x15   : > { %v299_v26 = vadd.f32 %v297_v18, %v283_v16  ;;  %v303_v27 = vadd.f32 %v301_v19, %v287_v17  ;;  %v321_v28 = vld [vmem:[%s803_s25 + $0x90] sm:$0xff]  ;;  %v325_v29 = vld [vmem:[%s803_s25 + $0x98] sm:$0xff]  ;;  %v329_v30 = vld [vmem:[%s803_s25 + $0xa0] sm:$0xff] }
  0x16   : > { %v307_v31 = vadd.f32 %v305_v20, %v291_v21  ;;  %v311_v32 = vadd.f32 %v309_v23, %v295_v22  ;;  %v333_v33 = vld [vmem:[%s803_s25 + $0xa8] sm:$0xff]  ;;  %v337_v34 = vld [vmem:[%s803_s25 + $0xb0] sm:$0xff]  ;;  %v341_v35 = vld [vmem:[%s803_s25 + $0xb8] sm:$0xff] }
  0x17   : > { %v315_v36 = vadd.f32 %v313_v24, %v299_v26  ;;  %v319_v37 = vadd.f32 %v317_v25, %v303_v27  ;;  %v345_v38 = vld [vmem:[%s803_s25 + $0xc0] sm:$0xff]  ;;  %v349_v39 = vld [vmem:[%s803_s25 + $0xc8] sm:$0xff]  ;;  %v353_v40 = vld [vmem:[%s803_s25 + $0xd0] sm:$0xff] }
  0x18   : > { %v323_v41 = vadd.f32 %v321_v28, %v307_v31  ;;  %v327_v42 = vadd.f32 %v325_v29, %v311_v32  ;;  %v357_v43 = vld [vmem:[%s803_s25 + $0xd8] sm:$0xff]  ;;  %v361_v44 = vld [vmem:[%s803_s25 + $0xe0] sm:$0xff]  ;;  %v365_v45 = vld [vmem:[%s803_s25 + $0xe8] sm:$0xff] }
  0x19   : > { %v331_v46 = vadd.f32 %v329_v30, %v315_v36  ;;  %v335_v47 = vadd.f32 %v333_v33, %v319_v37  ;;  %v369_v48 = vld [vmem:[%s803_s25 + $0xf0] sm:$0xff]  ;;  %v373_v49 = vld [vmem:[%s803_s25 + $0xf8] sm:$0xff]  ;;  %v258_v50 = vld [vmem:[%s803_s25 + $0x100] sm:$0xff] }
  0x1a   : > { %v339_v51 = vadd.f32 %v337_v34, %v323_v41  ;;  %v343_v52 = vadd.f32 %v341_v35, %v327_v42  ;;  %v260_v53 = vld [vmem:[%s803_s25 + $0x108] sm:$0xff]  ;;  %v262_v54 = vld [vmem:[%s803_s25 + $0x110] sm:$0xff]  ;;  %v264_v55 = vld [vmem:[%s803_s25 + $0x118] sm:$0xff] }
  0x1b   : > { %v347_v56 = vadd.f32 %v345_v38, %v331_v46  ;;  %v351_v57 = vadd.f32 %v349_v39, %v335_v47  ;;  %v266_v58 = vld [vmem:[%s803_s25 + $0x120] sm:$0xff]  ;;  %v270_v59 = vld [vmem:[%s803_s25 + $0x128] sm:$0xff]  ;;  %v274_v60 = vld [vmem:[%s803_s25 + $0x130] sm:$0xff] }
  0x1c   : > { %v355_v61 = vadd.f32 %v353_v40, %v339_v51  ;;  %v359_v62 = vadd.f32 %v357_v43, %v343_v52  ;;  %v268_v63 = vadd.f32 %v266_v58, %v258_v50  ;;  %v272_v0 = vadd.f32 %v270_v59, %v260_v53  ;;  %v278_v1 = vld [vmem:[%s803_s25 + $0x138] sm:$0xff]  ;;  %v282_v2 = vld [vmem:[%s803_s25 + $0x140] sm:$0xff]  ;;  %v286_v3 = vld [vmem:[%s803_s25 + $0x148] sm:$0xff] }
  0x1d   : > { %v363_v4 = vadd.f32 %v361_v44, %v347_v56  ;;  %v367_v5 = vadd.f32 %v365_v45, %v351_v57  ;;  %v276_v6 = vadd.f32 %v274_v60, %v262_v54  ;;  %v280_v7 = vadd.f32 %v278_v1, %v264_v55  ;;  %v290_v8 = vld [vmem:[%s803_s25 + $0x150] sm:$0xff]  ;;  %v294_v9 = vld [vmem:[%s803_s25 + $0x158] sm:$0xff]  ;;  %v298_v10 = vld [vmem:[%s803_s25 + $0x160] sm:$0xff] }
  0x1e   : > { %v371_v11 = vadd.f32 %v369_v48, %v355_v61  ;;  %v375_v12 = vadd.f32 %v373_v49, %v359_v62  ;;  %v284_v13 = vadd.f32 %v282_v2, %v268_v63  ;;  %v288_v14 = vadd.f32 %v286_v3, %v272_v0  ;;  %v302_v15 = vld [vmem:[%s803_s25 + $0x168] sm:$0xff]  ;;  %v306_v16 = vld [vmem:[%s803_s25 + $0x170] sm:$0xff]  ;;  %v310_v17 = vld [vmem:[%s803_s25 + $0x178] sm:$0xff] }
  0x1f   : > { %v377_v18 = vadd.f32 %v367_v5, %v363_v4  ;;  %v292_v19 = vadd.f32 %v290_v8, %v276_v6  ;;  %v296_v20 = vadd.f32 %v294_v9, %v280_v7  ;;  %v314_v21 = vld [vmem:[%s803_s25 + $0x180] sm:$0xff]  ;;  %v318_v22 = vld [vmem:[%s803_s25 + $0x188] sm:$0xff]  ;;  %v322_v26 = vld [vmem:[%s803_s25 + $0x190] sm:$0xff]  ;;  %v747_v62 = vmov 0.0  }
  0x20   : > { %v379_v23 = vadd.f32 %v375_v12, %v371_v11  ;;  %v300_v24 = vadd.f32 %v298_v10, %v284_v13  ;;  %v304_v25 = vadd.f32 %v302_v15, %v288_v14  ;;  %v326_v27 = vld [vmem:[%s803_s25 + $0x198] sm:$0xff]  ;;  %v330_v30 = vld [vmem:[%s803_s25 + $0x1a0] sm:$0xff]  ;;  %v334_v31 = vld [vmem:[%s803_s25 + $0x1a8] sm:$0xff]  ;;  %675 = vmatprep.subr.mxu0 %v747_v62  ;;  %682 = vmatprep.subr.mxu1 %v747_v62  ;;  %v403_v1 = vlaneseq }
  0x21   : > { %v308_v28 = vadd.f32 %v306_v16, %v292_v19  ;;  %v312_v29 = vadd.f32 %v310_v17, %v296_v20  ;;  %v338_v35 = vld [vmem:[%s803_s25 + $0x1b0] sm:$0xff]  ;;  %v342_v36 = vld [vmem:[%s803_s25 + $0x1b8] sm:$0xff]  ;;  %v346_v39 = vld [vmem:[%s803_s25 + $0x1c0] sm:$0xff]  ;;  %679 = vmatprep.mubr.msk.f32.mxu0 %vm748_vm0, %v747_v62  ;;  %686 = vmatprep.mubr.msk.f32.mxu1 %vm748_vm0, %v747_v62 }
  0x22   : > { %v381_v32 = vadd.f32 %v379_v23, %v377_v18  ;;  %v316_v33 = vadd.f32 %v314_v21, %v300_v24  ;;  %v320_v34 = vadd.f32 %v318_v22, %v304_v25  ;;  %v350_v40 = vld [vmem:[%s803_s25 + $0x1c8] sm:$0xff]  ;;  %v354_v43 = vld [vmem:[%s803_s25 + $0x1d0] sm:$0xff]  ;;  %v358_v44 = vld [vmem:[%s803_s25 + $0x1d8] sm:$0xff]  ;;  %v404_v2 = vand.u32 127, %v403_v1 }
  0x23   : > { %v324_v37 = vadd.f32 %v322_v26, %v308_v28  ;;  %v328_v38 = vadd.f32 %v326_v27, %v312_v29  ;;  %v362_v47 = vld [vmem:[%s803_s25 + $0x1e0] sm:$0xff]  ;;  %v366_v48 = vld [vmem:[%s803_s25 + $0x1e8] sm:$0xff]  ;;  %v370_v51 = vld [vmem:[%s803_s25 + $0x1f0] sm:$0xff]  ;;  %v406_v4 = vshrl.u32 %v403_v1, 7 }
  0x24   : > { %392 = vadd.xlane.f32.xlu0 %v381_v32  ;;  %v332_v41 = vadd.f32 %v330_v30, %v316_v33  ;;  %v336_v42 = vadd.f32 %v334_v31, %v320_v34  ;;  %v374_v52 = vld [vmem:[%s803_s25 + $0x1f8] sm:$0xff]  ;;  %v399_v63 = vld [vmem:[%s913_s1 + $0x8] sm:$0xff]  ;;  %v398_v0 = vld [vmem:[%s913_s1] sm:$0xff]  ;;  %v409_v5 = vadd.s32 4294967288, %v404_v2  ;;  %vm576_vm3 = vcmp.ge.s32.totalorder %v404_v2, 75 }
  0x25   : > { %v340_v45 = vadd.f32 %v338_v35, %v324_v37  ;;  %v344_v46 = vadd.f32 %v342_v36, %v328_v38  ;;  %676 = vmatpush3.msra.mxu0 %v399_v63  ;;  %v407_v6 = vsub.s32 %v404_v2, %v406_v4  ;;  %v491_v14 = vld [vmem:[%s915_s3 + $0x8] sm:$0xff]  ;;  %v490_v15 = vld [vmem:[%s915_s3] sm:$0xff]  ;;  %vm577_vm4 = vcmp.lt.s32.totalorder %v404_v2, 79 }
  0x26   : > { %v348_v49 = vadd.f32 %v346_v39, %v332_v41  ;;  %v352_v50 = vadd.f32 %v350_v40, %v336_v42  ;;  %677 = vmatprep.subr.mxu0 %v747_v62  ;;  %v412_v8 = vsub.s32 %v409_v5, %v406_v4  ;;  %683 = vmatpush3.msra.mxu1 %v491_v14  ;;  %v400_v16 = vld [vmem:[%s914_s2] sm:$0x1]  ;;  %vm887_vm5 = vmand %vm576_vm3, %vm577_vm4 }
  0x27   : > { %v356_v53 = vadd.f32 %v354_v43, %v340_v45  ;;  %v360_v54 = vadd.f32 %v358_v44, %v344_v46  ;;  %678 = vmatpush3.msra.mxu0 %v398_v0  ;;  %684 = vmatprep.subr.mxu1 %v747_v62  ;;  %v492_v21 = vld [vmem:[%s916_s4] sm:$0x1] }
  0x28   : > { %v364_v55 = vadd.f32 %v362_v47, %v348_v49  ;;  %v368_v56 = vadd.f32 %v366_v48, %v352_v50  ;;  %685 = vmatpush3.msra.mxu1 %v490_v15 }
  0x29   : > { %v372_v57 = vadd.f32 %v370_v51, %v356_v53  ;;  %v376_v58 = vadd.f32 %v374_v52, %v360_v54 }
  0x2a   : > { %v378_v59 = vadd.f32 %v368_v56, %v364_v55 }
  0x2b   : > { %v380_v60 = vadd.f32 %v376_v58, %v372_v57 }
  0x2d   : > { %v382_v61 = vadd.f32 %v380_v60, %v378_v59 }
  0x2f   : > { %394 = vadd.xlane.f32.xlu0 %v382_v61 }
  0xad   : > { %v393_v3 = vpop.xlane.xlu0 %392 }
  0xae   : > { %v396_v7 = vmul.f32 0.00024414063, %v393_v3 }
  0xb0   : > { %v408_v11 = vrot.slane %v396_v7, %v407_v6 }
  0xb8   : > { %v395_v9 = vpop.xlane.xlu0 %394 }
  0xb9   : > { %v397_v10 = vmul.f32 0.00024414063, %v395_v9 }
  0xbb   : > { %v413_v12 = vrot.slane %v397_v10, %v412_v8 }
  0xbd   : > { %v415_v13 = vsel %vm414_vm1, %v413_v12, %v408_v11 }
  0xbe   : > { %680 = vmatmul.mubr.msk.f32.vlgmr.msra.gmra.mxu0 %vm416_vm2, %v415_v13 }
 0x17e   : > { %v485_v17 = vpop.f32.mrf.mxu0 }
 0x17f   : > { %v486_v18 = vadd.f32 %v485_v17, %v400_v16 }
 0x180   : > { %v681_v19 = vpop.f32.mrf.mxu0 }
 0x181   : > { %v489_v20 = vmax.f32 %v486_v18, 0.0 }
 0x183   : > { %687 = vmatmul.mubr.msk.f32.vlgmr.msra.gmra.mxu1 %vm416_vm2, %v489_v20 }
 0x243   : > { %v562_v22 = vpop.f32.mrf.mxu1 }
 0x244   : > { %v563_v24 = vadd.f32 %v562_v22, %v492_v21 }
 0x245   : > { %v688_v25 = vpop.f32.mrf.mxu1 }
 0x246   : > { %v579_v26 = vsel %vm887_vm5, %v563_v24, -1e+30  ;;  %v566_v35 = vand.u32 2147483647, %v563_v24  ;;  %vm573_vm7 = vcmp.ge.f32.partialorder %v563_v24, 0.0 }
 0x247   : > { %v581_v27 = vsel %vm580_vm6, %v579_v26, -inf }
 0x248   : > { %582 = vmax.xlane.f32.xlu1 %v581_v27  ;;  %v567_v36 = vsub.f32 0.0, %v566_v35 }
 0x24a   : > { %v568_v37 = vmul.f32 1.442695, %v567_v36 }
 0x2d1   : > { %v583_v28 = vpop.xlane.xlu1 %582 }
 0x2d2   : > { %v584_v29 = vsub.f32 %v563_v24, %v583_v28 }
 0x2d4   : > { %v585_v30 = vsel %vm887_vm5, %v584_v29, 0.0 }
 0x2d5   : > { %v586_v31 = vmul.f32 1.442695, %v585_v30 }
 0x2d7   : > { %715 = vpow2.f32 %v586_v31 }
 0x2d8   : > { %717 = vpow2.f32 %v568_v37 }
 0x2e4   : > { %v716_v32 = vpop.eup %715 }
 0x2e5   : > { %v588_v33 = vsel %vm887_vm5, %v716_v32, 0.0  ;;  %v718_v38 = vpop.eup %717 }
 0x2e6   : > { %v589_v34 = vsel %vm580_vm6, %v588_v33, 0.0  ;;  %v570_v39 = vadd.f32 1.0, %v718_v38 }
 0x2e7   : > { %590 = vadd.xlane.f32.xlu1 %v589_v34 }
 0x2e8   : > { %719 = vrcp.f32 %v570_v39 }
 0x2f5   : > { %v720_v41 = vpop.eup %719 }
 0x2f6   : > { %v574_v42 = vmul.f32 %v720_v41, %v718_v38 }
 0x2f8   : > { %v575_v45 = vsel %vm573_vm7, %v720_v41, %v574_v42 }
 0x370   : > { %v591_v40 = vpop.xlane.xlu1 %590 }
 0x371   : > { %721 = vrcp.f32 %v591_v40 }
 0x37e   : > { %v722_v43 = vpop.eup %721 }
 0x37f   : > { %v593_v44 = vmul.f32 %v722_v43, %v588_v33 }
 0x381   : > { %v594_v46 = vsel %vm887_vm5, %v593_v44, %v575_v45 }
 0x382   : > { %595 = vst [vmem:[%s248_s15] sm:$0x1] %v594_v46 }
 0x383 PF: > { %s15_s20 = sadd.s32 1, %s745_s20   ;;  %s920_s18 = smov %s741_s19 }
 0x384   : > { %p12_p5 = scmp.ge.s32.totalorder %s15_s20, 4   ;;  %s921_s19 = smov %s923_s21 }
 0x386   :  { %14 = sbr.rel (!%p12_p5) target bundleno = 2 (0x2), region = 78 }

</bundles_post_ra>
